<compile_context>
chip_gen: v7x
topology: tpu7x:2x2x1
jax: 0.10.0
libtpu: 0.0.40
codegen_flags: <defaults>
</compile_context>

<pallas_src>
import functools

import jax
import jax.numpy as jnp
from jax import lax
from jax.experimental import pallas as pl
from jax.experimental.pallas import tpu as pltpu

DILATIONS = (1, 3, 5, 7)
SHIFTS = (-7, -5, -3, -1, 0, 1, 3, 5, 7)   # all shifts used by the dilated convs
MLP_SHIFTS = (-1, 0, 1)                    # convmlp conv1 (k=3, pad=1)
EPS = 1e-5


def feature_extraction_kernel(x_ref, wA_ref, wB_ref, wC_ref, g_ref, be_ref,
                              out_ref, rhs1_ref, rhs2_ref, *, L):
    C, BL = x_ref.shape
    x = x_ref[...].astype(jnp.float32)                      # (C, B*L) lane-dense

    # Hoisted lane-position-within-sequence iotas (JAX does not CSE these).
    lane_c = lax.broadcasted_iota(jnp.int32, (C, BL), 1) % L
    lane_4c = lax.broadcasted_iota(jnp.int32, (4 * C, BL), 1) % L
    ones_col = jnp.ones((BL, 1), jnp.float32)
    inv_n = 1.0 / float(BL)

    def shifted(v, s, lane_mod):
        # z[:, l] = v[:, l + s] if the source lies in the same length-L segment
        # (same batch element, inside [0, L)), else 0.  One roll for all batches.
        if s == 0:
            return v
        z = pltpu.roll(v, shift=(-s) % BL, axis=1)           # XLU, not MXU
        if s > 0:
            return jnp.where(lane_mod < L - s, z, 0.0)
        return jnp.where(lane_mod >= -s, z, 0.0)

    def bn_relu(y, gamma, beta):
        # Training-mode BatchNorm1d: lanes of y are the full (B, L) population.
        # Per-channel sum / sum-of-squares computed on the MXU (ones-vector
        # matmuls) to keep the XLU free for the rolls.
        mean = jnp.dot(y, ones_col, preferred_element_type=jnp.float32) * inv_n
        meansq = jnp.dot(y * y, ones_col, preferred_element_type=jnp.float32) * inv_n
        var = jnp.maximum(meansq - mean * mean, 0.0)         # guard cancellation
        a = gamma * lax.rsqrt(var + EPS)                     # fold BN into scale+shift
        c = beta - mean * a
        return jnp.maximum(y * a + c, 0.0)

    g = g_ref[...]                                           # (7C, 1) gammas
    be = be_ref[...]                                         # (7C, 1) betas

    # ---- stage 1: four dilated Conv1d branches, one fused MXU matmul ----
    # RHS = 9 shifted copies of x stacked on the contraction axis, written
    # straight into VMEM scratch (no concatenate copies).
    for m, s in enumerate(SHIFTS):
        rhs1_ref[pl.ds(m * C, C), :] = shifted(x, s, lane_c)
    y1 = jnp.dot(wA_ref[...], rhs1_ref[...],
                 preferred_element_type=jnp.float32)          # (4C, B*L)
    y1 = bn_relu(y1, g[0:4 * C], be[0:4 * C])

    # ---- stage 2: convmlp conv1 (4C -> 2C, k=3, pad=1), one fused matmul ----
    for m, s in enumerate(MLP_SHIFTS):
        rhs2_ref[pl.ds(m * 4 * C, 4 * C), :] = shifted(y1, s, lane_4c)
    y2 = jnp.dot(wB_ref[...], rhs2_ref[...],
                 preferred_element_type=jnp.float32)          # (2C, B*L)
    y2 = bn_relu(y2, g[4 * C:6 * C], be[4 * C:6 * C])

    # ---- stage 3: convmlp conv2 (2C -> C, k=1), pointwise matmul ----
    y3 = jnp.dot(wC_ref[...], y2, preferred_element_type=jnp.float32)  # (C, B*L)
    y3 = bn_relu(y3, g[6 * C:7 * C], be[6 * C:7 * C])

    out_ref[...] = y3.astype(out_ref.dtype)                  # one lane-dense store


def feature_extraction(x, kernel_params):
    B, C, L = x.shape
    assert L % 128 == 0, "sequence length must be lane-aligned (multiple of 128)"
    assert L >= 2 * max(DILATIONS) + 1, "sequence too short for the dilations"

    # Lane-dense layout plumbing in the wrapper (free relative to in-kernel copies).
    x_cl = jnp.transpose(x, (1, 0, 2)).reshape(C, B * L)      # (C, B*L)

    vmem = pl.BlockSpec(memory_space=pltpu.MemorySpace.VMEM)
    out_cl = pl.pallas_call(
        functools.partial(feature_extraction_kernel, L=L),
        out_shape=jax.ShapeDtypeStruct((C, B * L), jnp.float32),
        in_specs=[vmem] * (1 + len(kernel_params)),
        out_specs=vmem,
        scratch_shapes=[
            pltpu.VMEM((len(SHIFTS) * C, B * L), jnp.float32),      # rhs1
            pltpu.VMEM((len(MLP_SHIFTS) * 4 * C, B * L), jnp.float32),  # rhs2
        ],
    )(x_cl, *kernel_params)

    return jnp.transpose(out_cl.reshape(C, B, L), (1, 0, 2))  # back to (B, C, L)


# ---------------- parameter construction (deterministic, synthetic) ----------------
def init_params(key, C):
    ks = jax.random.split(key, 6)

    def u(k, shape, fan_in):
        bound = 1.0 / float(fan_in) ** 0.5
        return jax.random.uniform(k, shape, jnp.float32, -bound, bound)

    # PyTorch-layout params (Conv1d weight = (Cout, Cin, K)).
    wd_pt = u(ks[0], (4, C, C, 3), C * 3)                 # 4 dilated branches stacked
    bd_pt = u(ks[1], (4, C), C * 3)
    w1_pt = u(ks[2], (2 * C, 4 * C, 3), 4 * C * 3)
    b1_pt = u(ks[3], (2 * C,), 4 * C * 3)
    w2_pt = u(ks[4], (C, 2 * C, 1), 2 * C)
    b2_pt = u(ks[5], (C,), 2 * C)
    gd_pt = jnp.ones((4, C), jnp.float32)
    betad_pt = jnp.zeros((4, C), jnp.float32)
    g1_pt = jnp.ones((2 * C,), jnp.float32)
    be1_pt = jnp.zeros((2 * C,), jnp.float32)
    g2_pt = jnp.ones((C,), jnp.float32)
    be2_pt = jnp.zeros((C,), jnp.float32)

    # ---- fused kernel layouts (host-side; conv biases dropped: BN cancels them) ----
    # Stage-1 block weight: rows = branch output channels, col blocks = shift value.
    wA = jnp.zeros((4 * C, len(SHIFTS) * C), jnp.float32)
    for j, d in enumerate(DILATIONS):
        for k in range(3):
            m = SHIFTS.index((k - 1) * d)
            wA = wA.at[j * C:(j + 1) * C, m * C:(m + 1) * C].set(wd_pt[j, :, :, k])
    # Stage-2 block weight: taps k=0,1,2 (shifts -1,0,+1) side by side.
    wB = jnp.concatenate([w1_pt[:, :, k] for k in range(3)], axis=1)     # (2C, 12C)
    wC = w2_pt[:, :, 0]                                                  # (C, 2C)
    g_pack = jnp.concatenate([gd_pt.reshape(-1), g1_pt, g2_pt])[:, None]       # (7C,1)
    b_pack = jnp.concatenate([betad_pt.reshape(-1), be1_pt, be2_pt])[:, None]  # (7C,1)

    kernel_params = (wA, wB, wC, g_pack, b_pack)
    pt_params = (wd_pt, bd_pt, gd_pt, betad_pt, w1_pt, b1_pt, g1_pt, be1_pt,
                 w2_pt, b2_pt, g2_pt, be2_pt)
    return kernel_params, pt_params


# ---------------- pure-JAX reference (PyTorch semantics, biases included) ----------
def reference(x, pt_params):
    (wd, bd, gd, betad, w1, b1, g1, be1, w2, b2, g2, be2) = pt_params

    def conv(x, w, b, dilation, padding):
        y = lax.conv_general_dilated(
            x, w, window_strides=(1,), padding=[(padding, padding)],
            rhs_dilation=(dilation,), dimension_numbers=("NCH", "OIH", "NCH"))
        return y + b[None, :, None]

    def bn_relu(y, g, be):
        mean = jnp.mean(y, axis=(0, 2), keepdims=True)
        var = jnp.mean((y - mean) ** 2, axis=(0, 2), keepdims=True)
        yn = (y - mean) * lax.rsqrt(var + EPS)
        return jnp.maximum(yn * g[None, :, None] + be[None, :, None], 0.0)

    outs = [bn_relu(conv(x, wd[j], bd[j], d, d), gd[j], betad[j])
            for j, d in enumerate(DILATIONS)]
    cat = jnp.concatenate(outs, axis=1)
    y = bn_relu(conv(cat, w1, b1, 1, 1), g1, be1)
    y = bn_relu(conv(y, w2, b2, 1, 0), g2, be2)
    return y


if __name__ == "__main__":
    B, C, L = 2, 8, 128   # batch, in_channels, sequence length
    key = jax.random.PRNGKey(0)
    kx, kp = jax.random.split(key)
    x = jax.random.normal(kx, (B, C, L), jnp.float32)

    kernel_params, pt_params = init_params(kp, C)

    out = jax.block_until_ready(feature_extraction(x, kernel_params))
    ref = reference(x, pt_params)

    assert out.shape == (B, C, L), out.shape
    max_err = float(jnp.max(jnp.abs(out - ref)))
    assert jnp.allclose(out, ref, atol=1e-3, rtol=1e-3), max_err
    print("KERNEL_OK")
</pallas_src>

<mosaic_0001>
module attributes {stable_mosaic.version = 11 : i64} {
  func.func @feature_extraction_kernel(%arg0: memref<8x256xf32, #tpu.memory_space<vmem>>, %arg1: memref<32x72xf32, #tpu.memory_space<vmem>>, %arg2: memref<16x96xf32, #tpu.memory_space<vmem>>, %arg3: memref<8x16xf32, #tpu.memory_space<vmem>>, %arg4: memref<56x1xf32, #tpu.memory_space<vmem>>, %arg5: memref<56x1xf32, #tpu.memory_space<vmem>>, %arg6: memref<8x256xf32, #tpu.memory_space<vmem>>, %arg7: memref<72x256xf32, #tpu.memory_space<vmem>>, %arg8: memref<96x256xf32, #tpu.memory_space<vmem>>) attributes {dimension_semantics = [], scalar_prefetch = 0 : i64, scratch_operands = 2 : i64, tpu.core_type = #tpu.core_type<tc>} {
    %c0 = arith.constant 0 : index
    %c0_0 = arith.constant 0 : index
    %0 = vector.load %arg0[%c0, %c0_0] : memref<8x256xf32, #tpu.memory_space<vmem>>, vector<8x256xf32>
    %1 = tpu.iota {dimensions = array<i32: 1>} : vector<8x256xi32>
    %c128_i32 = arith.constant 128 : i32
    %c0_i32 = arith.constant 0 : i32
    %2 = arith.cmpi eq, %c128_i32, %c0_i32 : i32
    %c1_i32 = arith.constant 1 : i32
    %3 = arith.select %2, %c1_i32, %c128_i32 : i32
    %4 = vector.broadcast %3 : i32 to vector<8x256xi32>
    %5 = arith.remsi %1, %4 : vector<8x256xi32>
    %c0_i32_1 = arith.constant 0 : i32
    %6 = vector.broadcast %c0_i32_1 : i32 to vector<8x256xi32>
    %7 = arith.cmpi ne, %5, %6 : vector<8x256xi32>
    %c0_i32_2 = arith.constant 0 : i32
    %8 = vector.broadcast %c0_i32_2 : i32 to vector<8x256xi32>
    %9 = arith.cmpi slt, %5, %8 : vector<8x256xi32>
    %c0_i32_3 = arith.constant 0 : i32
    %10 = arith.cmpi slt, %3, %c0_i32_3 : i32
    %11 = vector.broadcast %10 : i1 to vector<8x256xi1>
    %12 = vector.broadcast %11 : vector<8x256xi1> to vector<8x256xi1>
    %13 = arith.xori %9, %12 : vector<8x256xi1>
    %14 = arith.andi %13, %7 : vector<8x256xi1>
    %15 = vector.broadcast %3 : i32 to vector<8x256xi32>
    %16 = arith.addi %5, %15 : vector<8x256xi32>
    %17 = arith.select %14, %16, %5 : vector<8x256xi1>, vector<8x256xi32>
    %18 = tpu.iota {dimensions = array<i32: 1>} : vector<32x256xi32>
    %c128_i32_4 = arith.constant 128 : i32
    %c0_i32_5 = arith.constant 0 : i32
    %19 = arith.cmpi eq, %c128_i32_4, %c0_i32_5 : i32
    %c1_i32_6 = arith.constant 1 : i32
    %20 = arith.select %19, %c1_i32_6, %c128_i32_4 : i32
    %21 = vector.broadcast %20 : i32 to vector<32x256xi32>
    %22 = arith.remsi %18, %21 : vector<32x256xi32>
    %c0_i32_7 = arith.constant 0 : i32
    %23 = vector.broadcast %c0_i32_7 : i32 to vector<32x256xi32>
    %24 = arith.cmpi ne, %22, %23 : vector<32x256xi32>
    %c0_i32_8 = arith.constant 0 : i32
    %25 = vector.broadcast %c0_i32_8 : i32 to vector<32x256xi32>
    %26 = arith.cmpi slt, %22, %25 : vector<32x256xi32>
    %c0_i32_9 = arith.constant 0 : i32
    %27 = arith.cmpi slt, %20, %c0_i32_9 : i32
    %28 = vector.broadcast %27 : i1 to vector<32x256xi1>
    %29 = vector.broadcast %28 : vector<32x256xi1> to vector<32x256xi1>
    %30 = arith.xori %26, %29 : vector<32x256xi1>
    %31 = arith.andi %30, %24 : vector<32x256xi1>
    %32 = vector.broadcast %20 : i32 to vector<32x256xi32>
    %33 = arith.addi %22, %32 : vector<32x256xi32>
    %34 = arith.select %31, %33, %22 : vector<32x256xi1>, vector<32x256xi32>
    %cst = arith.constant 1.000000e+00 : f32
    %35 = vector.broadcast %cst : f32 to vector<256x1xf32>
    %c0_10 = arith.constant 0 : index
    %c0_11 = arith.constant 0 : index
    %36 = vector.load %arg4[%c0_10, %c0_11] : memref<56x1xf32, #tpu.memory_space<vmem>>, vector<56x1xf32>
    %c0_12 = arith.constant 0 : index
    %c0_13 = arith.constant 0 : index
    %37 = vector.load %arg5[%c0_12, %c0_13] : memref<56x1xf32, #tpu.memory_space<vmem>>, vector<56x1xf32>
    %c7_i32 = arith.constant 7 : i32
    %38 = tpu.dynamic_rotate %0 by %c7_i32 dim 1 : vector<8x256xf32>, i32 -> vector<8x256xf32>
    %c7_i32_14 = arith.constant 7 : i32
    %39 = vector.broadcast %c7_i32_14 : i32 to vector<8x256xi32>
    %40 = arith.cmpi sge, %17, %39 : vector<8x256xi32>
    %cst_15 = arith.constant 0.000000e+00 : f32
    %41 = vector.broadcast %cst_15 : f32 to vector<8x256xf32>
    %42 = arith.select %40, %38, %41 : vector<8x256xi1>, vector<8x256xf32>
    %c0_16 = arith.constant 0 : index
    %c0_17 = arith.constant 0 : index
    %43 = vector.load %arg7[%c0_16, %c0_17] : memref<72x256xf32, #tpu.memory_space<vmem>>, vector<8x256xf32>
    tpu.vector_store %arg7[%c0_16, %c0_17], %42 {strides = array<i32>} : memref<72x256xf32, #tpu.memory_space<vmem>>, vector<8x256xf32>,
    %c5_i32 = arith.constant 5 : i32
    %44 = tpu.dynamic_rotate %0 by %c5_i32 dim 1 : vector<8x256xf32>, i32 -> vector<8x256xf32>
    %c5_i32_18 = arith.constant 5 : i32
    %45 = vector.broadcast %c5_i32_18 : i32 to vector<8x256xi32>
    %46 = arith.cmpi sge, %17, %45 : vector<8x256xi32>
    %cst_19 = arith.constant 0.000000e+00 : f32
    %47 = vector.broadcast %cst_19 : f32 to vector<8x256xf32>
    %48 = arith.select %46, %44, %47 : vector<8x256xi1>, vector<8x256xf32>
    %c8 = arith.constant 8 : index
    %c0_20 = arith.constant 0 : index
    %49 = vector.load %arg7[%c8, %c0_20] : memref<72x256xf32, #tpu.memory_space<vmem>>, vector<8x256xf32>
    tpu.vector_store %arg7[%c8, %c0_20], %48 {strides = array<i32>} : memref<72x256xf32, #tpu.memory_space<vmem>>, vector<8x256xf32>,
    %c3_i32 = arith.constant 3 : i32
    %50 = tpu.dynamic_rotate %0 by %c3_i32 dim 1 : vector<8x256xf32>, i32 -> vector<8x256xf32>
    %c3_i32_21 = arith.constant 3 : i32
    %51 = vector.broadcast %c3_i32_21 : i32 to vector<8x256xi32>
    %52 = arith.cmpi sge, %17, %51 : vector<8x256xi32>
    %cst_22 = arith.constant 0.000000e+00 : f32
    %53 = vector.broadcast %cst_22 : f32 to vector<8x256xf32>
    %54 = arith.select %52, %50, %53 : vector<8x256xi1>, vector<8x256xf32>
    %c16 = arith.constant 16 : index
    %c0_23 = arith.constant 0 : index
    %55 = vector.load %arg7[%c16, %c0_23] : memref<72x256xf32, #tpu.memory_space<vmem>>, vector<8x256xf32>
    tpu.vector_store %arg7[%c16, %c0_23], %54 {strides = array<i32>} : memref<72x256xf32, #tpu.memory_space<vmem>>, vector<8x256xf32>,
    %c1_i32_24 = arith.constant 1 : i32
    %56 = tpu.dynamic_rotate %0 by %c1_i32_24 dim 1 : vector<8x256xf32>, i32 -> vector<8x256xf32>
    %c1_i32_25 = arith.constant 1 : i32
    %57 = vector.broadcast %c1_i32_25 : i32 to vector<8x256xi32>
    %58 = arith.cmpi sge, %17, %57 : vector<8x256xi32>
    %cst_26 = arith.constant 0.000000e+00 : f32
    %59 = vector.broadcast %cst_26 : f32 to vector<8x256xf32>
    %60 = arith.select %58, %56, %59 : vector<8x256xi1>, vector<8x256xf32>
    %c24 = arith.constant 24 : index
    %c0_27 = arith.constant 0 : index
    %61 = vector.load %arg7[%c24, %c0_27] : memref<72x256xf32, #tpu.memory_space<vmem>>, vector<8x256xf32>
    tpu.vector_store %arg7[%c24, %c0_27], %60 {strides = array<i32>} : memref<72x256xf32, #tpu.memory_space<vmem>>, vector<8x256xf32>,
    %c32 = arith.constant 32 : index
    %c0_28 = arith.constant 0 : index
    %62 = vector.load %arg7[%c32, %c0_28] : memref<72x256xf32, #tpu.memory_space<vmem>>, vector<8x256xf32>
    tpu.vector_store %arg7[%c32, %c0_28], %0 {strides = array<i32>} : memref<72x256xf32, #tpu.memory_space<vmem>>, vector<8x256xf32>,
    %c255_i32 = arith.constant 255 : i32
    %63 = tpu.dynamic_rotate %0 by %c255_i32 dim 1 : vector<8x256xf32>, i32 -> vector<8x256xf32>
    %c127_i32 = arith.constant 127 : i32
    %64 = vector.broadcast %c127_i32 : i32 to vector<8x256xi32>
    %65 = arith.cmpi slt, %17, %64 : vector<8x256xi32>
    %cst_29 = arith.constant 0.000000e+00 : f32
    %66 = vector.broadcast %cst_29 : f32 to vector<8x256xf32>
    %67 = arith.select %65, %63, %66 : vector<8x256xi1>, vector<8x256xf32>
    %c40 = arith.constant 40 : index
    %c0_30 = arith.constant 0 : index
    %68 = vector.load %arg7[%c40, %c0_30] : memref<72x256xf32, #tpu.memory_space<vmem>>, vector<8x256xf32>
    tpu.vector_store %arg7[%c40, %c0_30], %67 {strides = array<i32>} : memref<72x256xf32, #tpu.memory_space<vmem>>, vector<8x256xf32>,
    %c253_i32 = arith.constant 253 : i32
    %69 = tpu.dynamic_rotate %0 by %c253_i32 dim 1 : vector<8x256xf32>, i32 -> vector<8x256xf32>
    %c125_i32 = arith.constant 125 : i32
    %70 = vector.broadcast %c125_i32 : i32 to vector<8x256xi32>
    %71 = arith.cmpi slt, %17, %70 : vector<8x256xi32>
    %cst_31 = arith.constant 0.000000e+00 : f32
    %72 = vector.broadcast %cst_31 : f32 to vector<8x256xf32>
    %73 = arith.select %71, %69, %72 : vector<8x256xi1>, vector<8x256xf32>
    %c48 = arith.constant 48 : index
    %c0_32 = arith.constant 0 : index
    %74 = vector.load %arg7[%c48, %c0_32] : memref<72x256xf32, #tpu.memory_space<vmem>>, vector<8x256xf32>
    tpu.vector_store %arg7[%c48, %c0_32], %73 {strides = array<i32>} : memref<72x256xf32, #tpu.memory_space<vmem>>, vector<8x256xf32>,
    %c251_i32 = arith.constant 251 : i32
    %75 = tpu.dynamic_rotate %0 by %c251_i32 dim 1 : vector<8x256xf32>, i32 -> vector<8x256xf32>
    %c123_i32 = arith.constant 123 : i32
    %76 = vector.broadcast %c123_i32 : i32 to vector<8x256xi32>
    %77 = arith.cmpi slt, %17, %76 : vector<8x256xi32>
    %cst_33 = arith.constant 0.000000e+00 : f32
    %78 = vector.broadcast %cst_33 : f32 to vector<8x256xf32>
    %79 = arith.select %77, %75, %78 : vector<8x256xi1>, vector<8x256xf32>
    %c56 = arith.constant 56 : index
    %c0_34 = arith.constant 0 : index
    %80 = vector.load %arg7[%c56, %c0_34] : memref<72x256xf32, #tpu.memory_space<vmem>>, vector<8x256xf32>
    tpu.vector_store %arg7[%c56, %c0_34], %79 {strides = array<i32>} : memref<72x256xf32, #tpu.memory_space<vmem>>, vector<8x256xf32>,
    %c249_i32 = arith.constant 249 : i32
    %81 = tpu.dynamic_rotate %0 by %c249_i32 dim 1 : vector<8x256xf32>, i32 -> vector<8x256xf32>
    %c121_i32 = arith.constant 121 : i32
    %82 = vector.broadcast %c121_i32 : i32 to vector<8x256xi32>
    %83 = arith.cmpi slt, %17, %82 : vector<8x256xi32>
    %cst_35 = arith.constant 0.000000e+00 : f32
    %84 = vector.broadcast %cst_35 : f32 to vector<8x256xf32>
    %85 = arith.select %83, %81, %84 : vector<8x256xi1>, vector<8x256xf32>
    %c64 = arith.constant 64 : index
    %c0_36 = arith.constant 0 : index
    %86 = vector.load %arg7[%c64, %c0_36] : memref<72x256xf32, #tpu.memory_space<vmem>>, vector<8x256xf32>
    tpu.vector_store %arg7[%c64, %c0_36], %85 {strides = array<i32>} : memref<72x256xf32, #tpu.memory_space<vmem>>, vector<8x256xf32>,
    %c0_37 = arith.constant 0 : index
    %c0_38 = arith.constant 0 : index
    %87 = vector.load %arg1[%c0_37, %c0_38] : memref<32x72xf32, #tpu.memory_space<vmem>>, vector<32x72xf32>
    %c0_39 = arith.constant 0 : index
    %c0_40 = arith.constant 0 : index
    %88 = vector.load %arg7[%c0_39, %c0_40] : memref<72x256xf32, #tpu.memory_space<vmem>>, vector<72x256xf32>
    %cst_41 = arith.constant dense<0.000000e+00> : vector<32x256xf32>
    %89 = tpu.matmul %87, %88, %cst_41 {dimension_numbers = #tpu.dot_dimension_numbers<[1], [0], [0], [1], [0, 0, 1, 1], [], []>} : vector<32x72xf32>, vector<72x256xf32>, vector<32x256xf32> -> vector<32x256xf32>
    %90 = vector.extract_strided_slice %36 {offsets = [0, 0], sizes = [32, 1], strides = [1, 1]} : vector<56x1xf32> to vector<32x1xf32>
    %91 = vector.extract_strided_slice %37 {offsets = [0, 0], sizes = [32, 1], strides = [1, 1]} : vector<56x1xf32> to vector<32x1xf32>
    %cst_42 = arith.constant dense<0.000000e+00> : vector<32x1xf32>
    %92 = tpu.matmul %89, %35, %cst_42 {dimension_numbers = #tpu.dot_dimension_numbers<[1], [0], [0], [1], [0, 0, 1, 1], [], []>} : vector<32x256xf32>, vector<256x1xf32>, vector<32x1xf32> -> vector<32x1xf32>
    %cst_43 = arith.constant 3.906250e-03 : f32
    %93 = vector.broadcast %cst_43 : f32 to vector<32x1xf32>
    %94 = arith.mulf %92, %93 : vector<32x1xf32>
    %95 = arith.mulf %89, %89 : vector<32x256xf32>
    %cst_44 = arith.constant dense<0.000000e+00> : vector<32x1xf32>
    %96 = tpu.matmul %95, %35, %cst_44 {dimension_numbers = #tpu.dot_dimension_numbers<[1], [0], [0], [1], [0, 0, 1, 1], [], []>} : vector<32x256xf32>, vector<256x1xf32>, vector<32x1xf32> -> vector<32x1xf32>
    %cst_45 = arith.constant 3.906250e-03 : f32
    %97 = vector.broadcast %cst_45 : f32 to vector<32x1xf32>
    %98 = arith.mulf %96, %97 : vector<32x1xf32>
    %99 = arith.mulf %94, %94 : vector<32x1xf32>
    %100 = arith.subf %98, %99 : vector<32x1xf32>
    %cst_46 = arith.constant 0.000000e+00 : f32
    %101 = vector.broadcast %cst_46 : f32 to vector<32x1xf32>
    %102 = arith.maximumf %100, %101 : vector<32x1xf32>
    %cst_47 = arith.constant 9.99999974E-6 : f32
    %103 = vector.broadcast %cst_47 : f32 to vector<32x1xf32>
    %104 = arith.addf %102, %103 : vector<32x1xf32>
    %105 = math.rsqrt %104 : vector<32x1xf32>
    %106 = arith.mulf %90, %105 : vector<32x1xf32>
    %107 = arith.mulf %94, %106 : vector<32x1xf32>
    %108 = arith.subf %91, %107 : vector<32x1xf32>
    %109 = vector.broadcast %106 : vector<32x1xf32> to vector<32x256xf32>
    %110 = arith.mulf %89, %109 : vector<32x256xf32>
    %111 = vector.broadcast %108 : vector<32x1xf32> to vector<32x256xf32>
    %112 = arith.addf %110, %111 : vector<32x256xf32>
    %cst_48 = arith.constant 0.000000e+00 : f32
    %113 = vector.broadcast %cst_48 : f32 to vector<32x256xf32>
    %114 = arith.maximumf %112, %113 : vector<32x256xf32>
    %c1_i32_49 = arith.constant 1 : i32
    %115 = tpu.dynamic_rotate %114 by %c1_i32_49 dim 1 : vector<32x256xf32>, i32 -> vector<32x256xf32>
    %c1_i32_50 = arith.constant 1 : i32
    %116 = vector.broadcast %c1_i32_50 : i32 to vector<32x256xi32>
    %117 = arith.cmpi sge, %34, %116 : vector<32x256xi32>
    %cst_51 = arith.constant 0.000000e+00 : f32
    %118 = vector.broadcast %cst_51 : f32 to vector<32x256xf32>
    %119 = arith.select %117, %115, %118 : vector<32x256xi1>, vector<32x256xf32>
    %c0_52 = arith.constant 0 : index
    %c0_53 = arith.constant 0 : index
    %120 = vector.load %arg8[%c0_52, %c0_53] : memref<96x256xf32, #tpu.memory_space<vmem>>, vector<32x256xf32>
    tpu.vector_store %arg8[%c0_52, %c0_53], %119 {strides = array<i32>} : memref<96x256xf32, #tpu.memory_space<vmem>>, vector<32x256xf32>,
    %c32_54 = arith.constant 32 : index
    %c0_55 = arith.constant 0 : index
    %121 = vector.load %arg8[%c32_54, %c0_55] : memref<96x256xf32, #tpu.memory_space<vmem>>, vector<32x256xf32>
    tpu.vector_store %arg8[%c32_54, %c0_55], %114 {strides = array<i32>} : memref<96x256xf32, #tpu.memory_space<vmem>>, vector<32x256xf32>,
    %c255_i32_56 = arith.constant 255 : i32
    %122 = tpu.dynamic_rotate %114 by %c255_i32_56 dim 1 : vector<32x256xf32>, i32 -> vector<32x256xf32>
    %c127_i32_57 = arith.constant 127 : i32
    %123 = vector.broadcast %c127_i32_57 : i32 to vector<32x256xi32>
    %124 = arith.cmpi slt, %34, %123 : vector<32x256xi32>
    %cst_58 = arith.constant 0.000000e+00 : f32
    %125 = vector.broadcast %cst_58 : f32 to vector<32x256xf32>
    %126 = arith.select %124, %122, %125 : vector<32x256xi1>, vector<32x256xf32>
    %c64_59 = arith.constant 64 : index
    %c0_60 = arith.constant 0 : index
    %127 = vector.load %arg8[%c64_59, %c0_60] : memref<96x256xf32, #tpu.memory_space<vmem>>, vector<32x256xf32>
    tpu.vector_store %arg8[%c64_59, %c0_60], %126 {strides = array<i32>} : memref<96x256xf32, #tpu.memory_space<vmem>>, vector<32x256xf32>,
    %c0_61 = arith.constant 0 : index
    %c0_62 = arith.constant 0 : index
    %128 = vector.load %arg2[%c0_61, %c0_62] : memref<16x96xf32, #tpu.memory_space<vmem>>, vector<16x96xf32>
    %c0_63 = arith.constant 0 : index
    %c0_64 = arith.constant 0 : index
    %129 = vector.load %arg8[%c0_63, %c0_64] : memref<96x256xf32, #tpu.memory_space<vmem>>, vector<96x256xf32>
    %cst_65 = arith.constant dense<0.000000e+00> : vector<16x256xf32>
    %130 = tpu.matmul %128, %129, %cst_65 {dimension_numbers = #tpu.dot_dimension_numbers<[1], [0], [0], [1], [0, 0, 1, 1], [], []>} : vector<16x96xf32>, vector<96x256xf32>, vector<16x256xf32> -> vector<16x256xf32>
    %131 = vector.extract_strided_slice %36 {offsets = [32, 0], sizes = [16, 1], strides = [1, 1]} : vector<56x1xf32> to vector<16x1xf32>
    %132 = vector.extract_strided_slice %37 {offsets = [32, 0], sizes = [16, 1], strides = [1, 1]} : vector<56x1xf32> to vector<16x1xf32>
    %cst_66 = arith.constant dense<0.000000e+00> : vector<16x1xf32>
    %133 = tpu.matmul %130, %35, %cst_66 {dimension_numbers = #tpu.dot_dimension_numbers<[1], [0], [0], [1], [0, 0, 1, 1], [], []>} : vector<16x256xf32>, vector<256x1xf32>, vector<16x1xf32> -> vector<16x1xf32>
    %cst_67 = arith.constant 3.906250e-03 : f32
    %134 = vector.broadcast %cst_67 : f32 to vector<16x1xf32>
    %135 = arith.mulf %133, %134 : vector<16x1xf32>
    %136 = arith.mulf %130, %130 : vector<16x256xf32>
    %cst_68 = arith.constant dense<0.000000e+00> : vector<16x1xf32>
    %137 = tpu.matmul %136, %35, %cst_68 {dimension_numbers = #tpu.dot_dimension_numbers<[1], [0], [0], [1], [0, 0, 1, 1], [], []>} : vector<16x256xf32>, vector<256x1xf32>, vector<16x1xf32> -> vector<16x1xf32>
    %cst_69 = arith.constant 3.906250e-03 : f32
    %138 = vector.broadcast %cst_69 : f32 to vector<16x1xf32>
    %139 = arith.mulf %137, %138 : vector<16x1xf32>
    %140 = arith.mulf %135, %135 : vector<16x1xf32>
    %141 = arith.subf %139, %140 : vector<16x1xf32>
    %cst_70 = arith.constant 0.000000e+00 : f32
    %142 = vector.broadcast %cst_70 : f32 to vector<16x1xf32>
    %143 = arith.maximumf %141, %142 : vector<16x1xf32>
    %cst_71 = arith.constant 9.99999974E-6 : f32
    %144 = vector.broadcast %cst_71 : f32 to vector<16x1xf32>
    %145 = arith.addf %143, %144 : vector<16x1xf32>
    %146 = math.rsqrt %145 : vector<16x1xf32>
    %147 = arith.mulf %131, %146 : vector<16x1xf32>
    %148 = arith.mulf %135, %147 : vector<16x1xf32>
    %149 = arith.subf %132, %148 : vector<16x1xf32>
    %150 = vector.broadcast %147 : vector<16x1xf32> to vector<16x256xf32>
    %151 = arith.mulf %130, %150 : vector<16x256xf32>
    %152 = vector.broadcast %149 : vector<16x1xf32> to vector<16x256xf32>
    %153 = arith.addf %151, %152 : vector<16x256xf32>
    %cst_72 = arith.constant 0.000000e+00 : f32
    %154 = vector.broadcast %cst_72 : f32 to vector<16x256xf32>
    %155 = arith.maximumf %153, %154 : vector<16x256xf32>
    %c0_73 = arith.constant 0 : index
    %c0_74 = arith.constant 0 : index
    %156 = vector.load %arg3[%c0_73, %c0_74] : memref<8x16xf32, #tpu.memory_space<vmem>>, vector<8x16xf32>
    %cst_75 = arith.constant dense<0.000000e+00> : vector<8x256xf32>
    %157 = tpu.matmul %156, %155, %cst_75 {dimension_numbers = #tpu.dot_dimension_numbers<[1], [0], [0], [1], [0, 0, 1, 1], [], []>} : vector<8x16xf32>, vector<16x256xf32>, vector<8x256xf32> -> vector<8x256xf32>
    %158 = vector.extract_strided_slice %36 {offsets = [48, 0], sizes = [8, 1], strides = [1, 1]} : vector<56x1xf32> to vector<8x1xf32>
    %159 = vector.extract_strided_slice %37 {offsets = [48, 0], sizes = [8, 1], strides = [1, 1]} : vector<56x1xf32> to vector<8x1xf32>
    %cst_76 = arith.constant dense<0.000000e+00> : vector<8x1xf32>
    %160 = tpu.matmul %157, %35, %cst_76 {dimension_numbers = #tpu.dot_dimension_numbers<[1], [0], [0], [1], [0, 0, 1, 1], [], []>} : vector<8x256xf32>, vector<256x1xf32>, vector<8x1xf32> -> vector<8x1xf32>
    %cst_77 = arith.constant 3.906250e-03 : f32
    %161 = vector.broadcast %cst_77 : f32 to vector<8x1xf32>
    %162 = arith.mulf %160, %161 : vector<8x1xf32>
    %163 = arith.mulf %157, %157 : vector<8x256xf32>
    %cst_78 = arith.constant dense<0.000000e+00> : vector<8x1xf32>
    %164 = tpu.matmul %163, %35, %cst_78 {dimension_numbers = #tpu.dot_dimension_numbers<[1], [0], [0], [1], [0, 0, 1, 1], [], []>} : vector<8x256xf32>, vector<256x1xf32>, vector<8x1xf32> -> vector<8x1xf32>
    %cst_79 = arith.constant 3.906250e-03 : f32
    %165 = vector.broadcast %cst_79 : f32 to vector<8x1xf32>
    %166 = arith.mulf %164, %165 : vector<8x1xf32>
    %167 = arith.mulf %162, %162 : vector<8x1xf32>
    %168 = arith.subf %166, %167 : vector<8x1xf32>
    %cst_80 = arith.constant 0.000000e+00 : f32
    %169 = vector.broadcast %cst_80 : f32 to vector<8x1xf32>
    %170 = arith.maximumf %168, %169 : vector<8x1xf32>
    %cst_81 = arith.constant 9.99999974E-6 : f32
    %171 = vector.broadcast %cst_81 : f32 to vector<8x1xf32>
    %172 = arith.addf %170, %171 : vector<8x1xf32>
    %173 = math.rsqrt %172 : vector<8x1xf32>
    %174 = arith.mulf %158, %173 : vector<8x1xf32>
    %175 = arith.mulf %162, %174 : vector<8x1xf32>
    %176 = arith.subf %159, %175 : vector<8x1xf32>
    %177 = vector.broadcast %174 : vector<8x1xf32> to vector<8x256xf32>
    %178 = arith.mulf %157, %177 : vector<8x256xf32>
    %179 = vector.broadcast %176 : vector<8x1xf32> to vector<8x256xf32>
    %180 = arith.addf %178, %179 : vector<8x256xf32>
    %cst_82 = arith.constant 0.000000e+00 : f32
    %181 = vector.broadcast %cst_82 : f32 to vector<8x256xf32>
    %182 = arith.maximumf %180, %181 : vector<8x256xf32>
    %c0_83 = arith.constant 0 : index
    %c0_84 = arith.constant 0 : index
    %183 = vector.load %arg6[%c0_83, %c0_84] : memref<8x256xf32, #tpu.memory_space<vmem>>, vector<8x256xf32>
    tpu.vector_store %arg6[%c0_83, %c0_84], %182 {strides = array<i32>} : memref<8x256xf32, #tpu.memory_space<vmem>>, vector<8x256xf32>,
    return
  }
}

</mosaic_0001>

<bundles_post_ra>
// kernel: tpu_custom_call.1
= control target key start
LH: loop header
LB: loop body
LE: loop exit
PB: predicated region body
PF: predicated region fallthrough
CT: control target
= control target key end

     0   :  { %s2273_s0 = inlined_call_operand.vmem [shape: f32[8,256], index: 0, kind: input, shape index: {}]   ;;  %s2274_s1 = inlined_call_operand.vmem [shape: f32[32,72], index: 1, kind: input, shape index: {}]   ;;  %s2275_s2 = inlined_call_operand.vmem [shape: f32[16,96], index: 2, kind: input, shape index: {}]   ;;  %s2276_s3 = inlined_call_operand.vmem [shape: f32[8,16], index: 3, kind: input, shape index: {}]   ;;  %s2277_s4 = inlined_call_operand.vmem [shape: f32[56,1], index: 4, kind: input, shape index: {}]   ;;  %s2278_s5 = inlined_call_operand.vmem [shape: f32[56,1], index: 5, kind: input, shape index: {}]   ;;  %s2279_s6 = inlined_call_operand.hbm [shape: f32[8,256], index: 6, kind: output, shape index: {}]  }
   0x1   :  { %v1851_v0 = vld [vmem:[%s2273_s0] sm:$0xff]  ;;  %v1856_v1 = vld [vmem:[%s2273_s0 + $0x8] sm:$0xff] }
   0x2   :  { %11 = vsyncpa [#allocation5], 0  ;;  %v1695_v2 = vpack.i.bf16 %v1856_v1, %v1851_v0  ;;  %s1800_s25 = smov 3   ;;  %s1801_s26 = smov 7   ;;  %v1808_v3 = vmov 0.0   ;;  %v26_v5 = vlaneseq  ;;  %v173_v57 = vld [vmem:[%s2274_s1] sm:$0xff] }
   0x3   :  { %s1802_s27 = smov 1   ;;  %s1803_s28 = smov 5   ;;  %272 = vmatprep.mubr.f32.mxu0 %v1808_v3  ;;  %v1809_v4 = vmov 1.0|1.0   ;;  %v174_v58 = vld [vmem:[%s2274_s1 + $0x8] sm:$0xff]  ;;  %v175_v59 = vld [vmem:[%s2274_s1 + $0x10] sm:$0xff] }
   0x4   :  { %1696 = vrot.lane.b32.xlu1 %v1695_v2, %s1800_s25  ;;  %1686 = vrot.lane.b32.xlu0 %v1695_v2, %s1801_s26  ;;  %s1804_s29 = smov 127   ;;  %s1805_s30 = smov 125   ;;  %v1881_v6 = vand.u32 127, %v26_v5  ;;  %v176_v60 = vld [vmem:[%s2274_s1 + $0x18] sm:$0xff] }
   0x5   :  { %s1806_s0 = smov 123   ;;  %s1807_s7 = smov 121   ;;  %1540 = vmatprep.subr.bf16.mxu1 %v1809_v4 }
   0x6   :  { %1541 = vmatpush3.bf16.msra.mxu1 %v1809_v4  ;;  %v28_v7 = vadd.s32 128, %v1881_v6  ;;  %vm97_vm0 = vcmp.lt.s32.totalorder %v1881_v6, 3  ;;  %vm110_vm1 = vcmp.lt.s32.totalorder %v1881_v6, 1  ;;  %vm71_vm2 = vcmp.lt.s32.totalorder %v1881_v6, 7  ;;  %s1812_s21 = smov [#allocation4]  }
   0x7   :  { %1542 = vmatprep.subr.bf16.mxu1 %v1809_v4  ;;  %vm84_vm3 = vcmp.lt.s32.totalorder %v1881_v6, 5  ;;  %vm74_vm4 = vcmp.ge.s32.totalorder %v1881_v6, 7  ;;  %vm87_vm5 = vcmp.ge.s32.totalorder %v1881_v6, 5  ;;  %vm125_vm6 = vcmp.lt.s32.totalorder %v1881_v6, 127  ;;  %s1235_s22 = sshll.u32 %s1812_s21, 4  ;;  %s1236_s22 = int_to_ptr.vmem [resolvable:$true] %s1235_s22 }
   0x8   :  { %1701 = vrot.lane.b32.xlu1 %v1695_v2, %s1802_s27  ;;  %1691 = vrot.lane.b32.xlu0 %v1695_v2, %s1803_s28  ;;  %v1884_v10 = vand.u32 127, %v28_v7  ;;  %vm100_vm9 = vcmp.ge.s32.totalorder %v1881_v6, 3  ;;  %vm113_vm10 = vcmp.ge.s32.totalorder %v1881_v6, 1  ;;  %vm1520_vm14 = vmpackc.low %vm87_vm5, %vm74_vm4  ;;  %vm138_vm15 = vcmp.lt.s32.totalorder %v1881_v6, 125  ;;  %p1781_p1 = scmp.lt.s32.totalorder %s1236_s22, %s1236_s22 }
   0x9   :  { %vm151_vm4 = vcmp.lt.s32.totalorder %v1881_v6, 123  ;;  %vm1810_vm5 = vmmov 1  }
   0xa   :  { %1543 = vmatpush3.bf16.msra.mxu1 %v1809_v4  ;;  %vm75_vm7 = vcmp.ge.s32.totalorder %v1884_v10, 7  ;;  %vm88_vm8 = vcmp.ge.s32.totalorder %v1884_v10, 5  ;;  %vm101_vm11 = vcmp.ge.s32.totalorder %v1884_v10, 3  ;;  %vm114_vm12 = vcmp.ge.s32.totalorder %v1884_v10, 1 }
   0xb   :  { %1544 = vmatprep.subr.bf16.mxu1 %v1809_v4  ;;  %vm1907_vm13 = vmpackc.low %vm88_vm8, %vm75_vm7  ;;  %vm142_vm8 = vcmp.lt.s32.totalorder %v1884_v10, 125 }
   0xc   :  { %1706 = vrot.lane.b32.xlu0 %v1695_v2, %s1804_s29  ;;  %1711 = vrot.lane.b32.xlu1 %v1695_v2, %s1805_s30 }
   0xe   :  { %1545 = vmatpush3.bf16.msra.mxu1 %v1809_v4 }
   0xf   :  { %1546 = vmatprep.subr.bf16.mxu1 %v1809_v4 }
  0x10   :  { %1716 = vrot.lane.b32.xlu0 %v1695_v2, %s1806_s0  ;;  %160 = vrot.lane.b32.xlu1 %v1851_v0, %s1807_s7 }
  0x12   :  { %1547 = vmatpush3.bf16.msra.mxu1 %v1809_v4 }
  0x13   :  { %1548 = vmatprep.subr.bf16.mxu1 %v1809_v4 }
  0x14   :  { %162 = vrot.lane.b32.xlu0 %v1856_v1, %s1807_s7 }
  0x16   :  { %1549 = vmatpush3.bf16.msra.mxu1 %v1809_v4 }
  0x17   :  { %1550 = vmatprep.subr.bf16.mxu1 %v1809_v4 }
  0x1a   :  { %1551 = vmatpush3.bf16.msra.mxu1 %v1809_v4 }
  0x1b   :  { %1552 = vmatprep.subr.bf16.mxu1 %v1809_v4 }
  0x1e   :  { %1553 = vmatpush3.bf16.msra.mxu1 %v1809_v4 }
  0x1f   :  { %1554 = vmatprep.subr.bf16.mxu1 %v1809_v4 }
  0x22   :  { %1555 = vmatpush3.bf16.msra.mxu1 %v1809_v4 }
  0x76   :  { %v1697_v8 = vpop.permute.xlu1 %1696  ;;  %v1687_v9 = vpop.permute.xlu0 %1686 }
  0x77   :  { %v1699_v11 = vunpack.i.h.bf16 %v1697_v8  ;;  %v1698_v12 = vunpack.i.l.bf16 %v1697_v8  ;;  %v1689_v13 = vunpack.i.h.bf16 %v1687_v9  ;;  %v1688_v14 = vunpack.i.l.bf16 %v1687_v9 }
  0x79   :  { %v98_v21 = vsel %vm97_vm0, %v1698_v12, %v1699_v11  ;;  %v72_v22 = vsel %vm71_vm2, %v1688_v14, %v1689_v13  ;;  %v73_v26 = vsel %vm71_vm2, %v1689_v13, %v1688_v14  ;;  %vm1523_vm2 = vmpackc.low %vm114_vm12, %vm101_vm11  ;;  %v99_v36 = vsel %vm97_vm0, %v1699_v11, %v1698_v12 }
  0x7a   :  { %v1702_v15 = vpop.permute.xlu1 %1701  ;;  %v1692_v16 = vpop.permute.xlu0 %1691  ;;  %vm1526_vm0 = vmpackc.low %vm113_vm10, %vm100_vm9  ;;  %vm155_vm11 = vcmp.lt.s32.totalorder %v1884_v10, 123 }
  0x7b   :  { %v1704_v17 = vunpack.i.h.bf16 %v1702_v15  ;;  %v1703_v18 = vunpack.i.l.bf16 %v1702_v15  ;;  %v1694_v19 = vunpack.i.h.bf16 %v1692_v16  ;;  %v1693_v20 = vunpack.i.l.bf16 %v1692_v16  ;;  %vm1532_vm9 = vmpackc.low %vm125_vm6, %vm1810_vm5 }
  0x7d   :  { %v111_v23 = vsel %vm110_vm1, %v1703_v18, %v1704_v17  ;;  %v85_v24 = vsel %vm84_vm3, %v1693_v20, %v1694_v19  ;;  %v86_v27 = vsel %vm84_vm3, %v1694_v19, %v1693_v20  ;;  %v112_v37 = vsel %vm110_vm1, %v1704_v17, %v1703_v18 }
  0x7e   :  { %v1516_v28 = vpack.c.bf16 %v85_v24, %v72_v22  ;;  %v1519_v29 = vpack.c.bf16 %v86_v27, %v73_v26  ;;  %v1707_v30 = vpop.permute.xlu0 %1706  ;;  %v1712_v31 = vpop.permute.xlu1 %1711  ;;  %v1522_v38 = vpack.c.bf16 %v111_v23, %v98_v21  ;;  %vm129_vm3 = vcmp.lt.s32.totalorder %v1884_v10, 127 }
  0x7f   :  { %v1709_v32 = vunpack.i.h.bf16 %v1707_v30  ;;  %v1708_v33 = vunpack.i.l.bf16 %v1707_v30  ;;  %v1714_v34 = vunpack.i.h.bf16 %v1712_v31  ;;  %v1713_v35 = vunpack.i.l.bf16 %v1712_v31  ;;  %vm1529_vm7 = vmpackc.low %vm129_vm3, %vm1810_vm5 }
  0x80   :  { %1518 = vmatprep.subr.msk.bf16.mxu0 %vm1907_vm13, %v1516_v28  ;;  %v1525_v43 = vpack.c.bf16 %v112_v37, %v99_v36  ;;  %vm1535_vm13 = vmpackc.low %vm155_vm11, %vm142_vm8  ;;  %vm195_vm5 = vcmask 588800   ;;  %v1811_v17 = vmov 0  }
  0x81   :  { %1521 = vmatpush1.bf16.msk.msra.mxu0 %vm1520_vm14, %v1519_v29  ;;  %v127_v39 = vsel %vm125_vm6, %v1709_v32, %v1708_v33  ;;  %v126_v40 = vsel %vm125_vm6, %v1708_v33, %v1709_v32  ;;  %v140_v44 = vsel %vm138_vm15, %v1714_v34, %v1713_v35  ;;  %v139_v49 = vsel %vm138_vm15, %v1713_v35, %v1714_v34 }
  0x82   :  { %v1528_v41 = vpack.c.bf16 %v127_v39, %v1856_v1  ;;  %1524 = vmatprep.subr.msk.bf16.mxu0 %vm1523_vm2, %v1522_v38  ;;  %v1717_v42 = vpop.permute.xlu0 %1716  ;;  %v1531_v47 = vpack.c.bf16 %v126_v40, %v1851_v0  ;;  %v161_v52 = vpop.permute.xlu1 %160  ;;  %vm164_vm14 = vcmp.lt.s32.totalorder %v1881_v6, 121  ;;  %vm1538_vm2 = vmpackc.low %vm151_vm4, %vm138_vm15  ;;  %1720 = vset.pattern.permute.xlu1 %v1811_v17  ;;  %v668_v6 = vld [vmem:[%s2275_s2 + $0x8] sm:$0xff] }
  0x83   :  { %v1719_v45 = vunpack.i.h.bf16 %v1717_v42  ;;  %v1718_v46 = vunpack.i.l.bf16 %v1717_v42  ;;  %1721 = vset.pattern.permute.xlu0 %v1811_v17  ;;  %v54_v17 = vld [vmem:[%s2277_s4 + $0x8] sm:$0xff]  ;;  %vm2109_vm15 = vmpackc.low %vm114_vm12, %vm114_vm12  ;;  %vm693_vm12 = vcmask 785408  }
  0x85   :  { %1527 = vmatpush1.bf16.msk.msra.mxu0 %vm1526_vm0, %v1525_v43  ;;  %v153_v48 = vsel %vm151_vm4, %v1719_v45, %v1718_v46  ;;  %v152_v50 = vsel %vm151_vm4, %v1718_v46, %v1719_v45  ;;  %vm168_vm0 = vcmp.lt.s32.totalorder %v1884_v10, 121  ;;  %vm2116_vm4 = vmpackc.low %vm113_vm10, %vm113_vm10 }
  0x86   :  { %v1534_v51 = vpack.c.bf16 %v153_v48, %v140_v44  ;;  %1530 = vmatprep.subr.msk.bf16.mxu0 %vm1529_vm7, %v1528_v41  ;;  %v163_v53 = vpop.permute.xlu0 %162  ;;  %v1537_v54 = vpack.c.bf16 %v152_v50, %v139_v49  ;;  %vm1596_vm10 = vmpackc.low %vm125_vm6, %vm125_vm6 }
  0x87   :  { %v166_v55 = vsel %vm164_vm14, %v163_v53, %v161_v52  ;;  %v165_v56 = vsel %vm164_vm14, %v161_v52, %v163_v53 }
  0x89   :  { %1533 = vmatpush1.bf16.msk.msra.mxu0 %vm1532_vm9, %v1531_v47 }
  0x8a   :  { %1536 = vmatprep.subr.msk.bf16.mxu0 %vm1535_vm13, %v1534_v51 }
  0x8d   :  { %1539 = vmatpush1.bf16.msk.msra.mxu0 %vm1538_vm2, %v1537_v54 }
  0x8e   :  { %1264 = vmatprep.subr.msk.mxu0 %vm168_vm0, %v166_v55 }
  0x91   :  { %1265 = vmatpush1.msk.msra.mxu0 %vm164_vm14, %v165_v56 }
  0x92   :  { %1243 = vmatmul.mubr.msk.f32.vlgmr.msra.gmra.mrb[0].mxu0 %vm195_vm5, %v173_v57  ;;  %1556 = vmatprep.subr.bf16.mxu0 %v1809_v4 }
  0x93   :  { %278 = vmatprep.mubr.f32.mxu0 %v1808_v3  ;;  %1557 = vmatpush3.bf16.msra.mxu0 %v1809_v4 }
  0x94   :  { %1558 = vmatprep.subr.bf16.mxu0 %v1809_v4 }
  0x96   :  { %1244 = vmatmul.mubr.msk.f32.gmra.mrb[2].mxu0 %vm195_vm5, %v174_v58 }
  0x97   :  { %284 = vmatprep.mubr.f32.mxu0 %v1808_v3  ;;  %1559 = vmatpush3.bf16.msra.mxu0 %v1809_v4 }
  0x98   :  { %1560 = vmatprep.subr.bf16.mxu0 %v1809_v4 }
  0x9a   :  { %1245 = vmatmul.mubr.msk.f32.gmra.mrb[4].mxu0 %vm195_vm5, %v175_v59 }
  0x9b   :  { %290 = vmatprep.mubr.f32.mxu0 %v1808_v3  ;;  %1561 = vmatpush3.bf16.msra.mxu0 %v1809_v4 }
  0x9c   :  { %1562 = vmatprep.subr.bf16.mxu0 %v1809_v4 }
  0x9e   :  { %1246 = vmatmul.mubr.msk.f32.gmra.mrb[6].mxu0 %vm195_vm5, %v176_v60 }
  0x9f   :  { %1563 = vmatpush3.bf16.msra.mxu0 %v1809_v4 }
  0xa0   :  { %1564 = vmatprep.subr.bf16.mxu0 %v1809_v4 }
  0xa3   :  { %1565 = vmatpush3.bf16.msra.mxu0 %v1809_v4 }
  0xa4   :  { %1566 = vmatprep.subr.bf16.mxu0 %v1809_v4 }
  0xa7   :  { %1567 = vmatpush3.bf16.msra.mxu0 %v1809_v4 }
  0xa8   :  { %1568 = vmatprep.subr.bf16.mxu0 %v1809_v4 }
  0xab   :  { %1569 = vmatpush3.bf16.msra.mxu0 %v1809_v4 }
  0xac   :  { %1570 = vmatprep.subr.bf16.mxu0 %v1809_v4 }
  0xaf   :  { %1571 = vmatpush3.bf16.msra.mxu0 %v1809_v4 }
  0xb0   :  { %1604 = vmatprep.subr.bf16.mxu0 %v1809_v4 }
 0x165   :  { %v1998_v61 = vpop.f32.mrb[0].mxu0 }
 0x166   :  { %v2000_v62 = vpop.f32.mrb[1].mxu0  ;;  %v386_v0 = vmul.f32 %v1998_v61, %v1998_v61 }
 0x167   :  { %v387_v63 = vmul.f32 %v2000_v62, %v2000_v62  ;;  %361 = vmatprep.mubr.f32.mxu1 %v2000_v62 }
 0x168   :  { %362 = vmatmul.mubr.f32.vlgmr.msra.gmra.mrb[0].mxu1 %v1998_v61 }
 0x169   :  { %v2008_v1 = vpop.f32.mrb[2].mxu0  ;;  %458 = vmatprep.mubr.f32.mxu0 %v387_v63 }
 0x16a   :  { %v2010_v2 = vpop.f32.mrb[3].mxu0  ;;  %459 = vmatmul.mubr.f32.vlgmr.msra.gmra.mrb[8].mxu0 %v386_v0  ;;  %v388_v7 = vmul.f32 %v2008_v1, %v2008_v1 }
 0x16b   :  { %v389_v5 = vmul.f32 %v2010_v2, %v2010_v2  ;;  %366 = vmatprep.mubr.f32.mxu1 %v2010_v2  ;;  %1605 = vmatpush3.bf16.msra.mxu0 %v1809_v4 }
 0x16c   :  { %367 = vmatmul.mubr.f32.gmra.mrb[2].mxu1 %v2008_v1  ;;  %1606 = vmatprep.subr.bf16.mxu0 %v1809_v4 }
 0x16d   :  { %v2020_v8 = vpop.f32.mrb[4].mxu0  ;;  %463 = vmatprep.mubr.f32.mxu0 %v389_v5 }
 0x16e   :  { %v2022_v9 = vpop.f32.mrb[5].mxu0  ;;  %464 = vmatmul.mubr.f32.gmra.mrb[10].mxu0 %v388_v7  ;;  %v390_v12 = vmul.f32 %v2020_v8, %v2020_v8  ;;  %v53_v7 = vld [vmem:[%s2277_s4] sm:$0xff] }
 0x16f   :  { %v391_v11 = vmul.f32 %v2022_v9, %v2022_v9  ;;  %371 = vmatprep.mubr.f32.mxu1 %v2022_v9  ;;  %1607 = vmatpush3.bf16.msra.mxu0 %v1809_v4 }
 0x170   :  { %372 = vmatmul.mubr.f32.gmra.mrb[4].mxu1 %v2020_v8  ;;  %1608 = vmatprep.subr.bf16.mxu0 %v1809_v4 }
 0x171   :  { %v2032_v13 = vpop.f32.mrb[6].mxu0  ;;  %468 = vmatprep.mubr.f32.mxu0 %v391_v11 }
 0x172   :  { %v2034_v14 = vpop.f32.mrb[7].mxu0  ;;  %469 = vmatmul.mubr.f32.gmra.mrb[12].mxu0 %v390_v12  ;;  %v392_v16 = vmul.f32 %v2032_v13, %v2032_v13 }
 0x173   :  { %v393_v15 = vmul.f32 %v2034_v14, %v2034_v14  ;;  %376 = vmatprep.mubr.f32.mxu1 %v2034_v14  ;;  %1609 = vmatpush3.bf16.msra.mxu0 %v1809_v4 }
 0x174   :  { %377 = vmatmul.mubr.f32.gmra.mrb[6].mxu1 %v2032_v13  ;;  %1610 = vmatprep.subr.bf16.mxu0 %v1809_v4 }
 0x175   :  { %473 = vmatprep.mubr.f32.mxu0 %v393_v15  ;;  %764 = vmatprep.mubr.f32.mxu1 %v1808_v3 }
 0x176   :  { %474 = vmatmul.mubr.f32.gmra.mrb[14].mxu0 %v392_v16 }
 0x177   :  { %1611 = vmatpush3.bf16.msra.mxu0 %v1809_v4 }
 0x178   :  { %1612 = vmatprep.subr.bf16.mxu0 %v1809_v4 }
 0x17b   :  { %1613 = vmatpush3.bf16.msra.mxu0 %v1809_v4 }
 0x17c   :  { %1614 = vmatprep.subr.bf16.mxu0 %v1809_v4 }
 0x17f   :  { %1615 = vmatpush3.bf16.msra.mxu0 %v1809_v4 }
 0x180   :  { %1616 = vmatprep.subr.bf16.mxu0 %v1809_v4 }
 0x183   :  { %1617 = vmatpush3.bf16.msra.mxu0 %v1809_v4 }
 0x184   :  { %1618 = vmatprep.subr.bf16.mxu0 %v1809_v4 }
 0x187   :  { %1619 = vmatpush3.bf16.msra.mxu0 %v1809_v4 }
 0x23b   :  { %v1314_v18 = vpop.f32.mrb[0].mxu1 }
 0x23c   :  { %v1315_v19 = vpop.f32.mrb[1].mxu1 }
 0x23d   :  { %v1316_v20 = vadd.f32 %v1315_v19, %v1314_v18  ;;  %v1358_v21 = vpop.f32.mrb[8].mxu0  ;;  %v60_v18 = vld [vmem:[%s2278_s5] sm:$0xff] }
 0x23e   :  { %v1359_v22 = vpop.f32.mrb[9].mxu0 }
 0x23f   :  { %v382_v23 = vmul.f32 0.00390625, %v1316_v20  ;;  %v1360_v24 = vadd.f32 %v1359_v22, %v1358_v21  ;;  %v1317_v25 = vpop.f32.mrb[2].mxu1 }
 0x240   :  { %v1318_v26 = vpop.f32.mrb[3].mxu1 }
 0x241   :  { %v483_v27 = vmul.f32 %v382_v23, %v382_v23  ;;  %v479_v28 = vmul.f32 0.00390625, %v1360_v24  ;;  %v1319_v29 = vadd.f32 %v1318_v26, %v1317_v25  ;;  %v1361_v30 = vpop.f32.mrb[10].mxu0  ;;  %v55_v24 = vld [vmem:[%s2277_s4 + $0x10] sm:$0xff]  ;;  %v61_v25 = vld [vmem:[%s2278_s5 + $0x8] sm:$0xff] }
 0x242   :  { %v1362_v31 = vpop.f32.mrb[11].mxu0 }
 0x243   :  { %v487_v32 = vsub.f32 %v479_v28, %v483_v27  ;;  %v383_v33 = vmul.f32 0.00390625, %v1319_v29  ;;  %v1363_v34 = vadd.f32 %v1362_v31, %v1361_v30  ;;  %v1320_v35 = vpop.f32.mrb[4].mxu1  ;;  %v56_v31 = vld [vmem:[%s2277_s4 + $0x18] sm:$0xff] }
 0x244   :  { %v1321_v36 = vpop.f32.mrb[5].mxu1 }
 0x245   :  { %v491_v37 = vmax.f32 %v487_v32, 0.0  ;;  %v484_v38 = vmul.f32 %v383_v33, %v383_v33  ;;  %v480_v39 = vmul.f32 0.00390625, %v1363_v34  ;;  %v1322_v40 = vadd.f32 %v1321_v36, %v1320_v35  ;;  %v1364_v41 = vpop.f32.mrb[12].mxu0 }
 0x246   :  { %v1365_v42 = vpop.f32.mrb[13].mxu0 }
 0x247   :  { %v495_v43 = vadd.f32 1e-05, %v491_v37  ;;  %v488_v44 = vsub.f32 %v480_v39, %v484_v38  ;;  %v384_v45 = vmul.f32 0.00390625, %v1322_v40  ;;  %v1366_v46 = vadd.f32 %v1365_v42, %v1364_v41  ;;  %v1323_v47 = vpop.f32.mrb[6].mxu1 }
 0x248   :  { %v1324_v48 = vpop.f32.mrb[7].mxu1 }
 0x249   :  { %1762 = vrsqrt.f32 %v495_v43  ;;  %v492_v49 = vmax.f32 %v488_v44, 0.0  ;;  %v485_v50 = vmul.f32 %v384_v45, %v384_v45  ;;  %v481_v51 = vmul.f32 0.00390625, %v1366_v46  ;;  %v1367_v52 = vpop.f32.mrb[14].mxu0 }
 0x24a   :  { %v1325_v53 = vadd.f32 %v1324_v48, %v1323_v47  ;;  %v1368_v54 = vpop.f32.mrb[15].mxu0 }
 0x24b   :  { %v496_v55 = vadd.f32 1e-05, %v492_v49  ;;  %v489_v56 = vsub.f32 %v481_v51, %v485_v50  ;;  %v1369_v57 = vadd.f32 %v1368_v54, %v1367_v52 }
 0x24c   :  { %v385_v58 = vmul.f32 0.00390625, %v1325_v53 }
 0x24d   :  { %1764 = vrsqrt.f32 %v496_v55  ;;  %v493_v59 = vmax.f32 %v489_v56, 0.0  ;;  %v482_v60 = vmul.f32 0.00390625, %v1369_v57 }
 0x24e   :  { %v486_v63 = vmul.f32 %v385_v58, %v385_v58 }
 0x24f   :  { %v497_v0 = vadd.f32 1e-05, %v493_v59 }
 0x250   :  { %v490_v5 = vsub.f32 %v482_v60, %v486_v63 }
 0x251   :  { %1766 = vrsqrt.f32 %v497_v0 }
 0x252   :  { %v494_v11 = vmax.f32 %v490_v5, 0.0 }
 0x253   :  { %v1763_v12 = vpop.eup %1762 }
 0x254   :  { %v498_v15 = vadd.f32 1e-05, %v494_v11  ;;  %v503_v16 = vmul.f32 %v1763_v12, %v53_v7 }
 0x256   :  { %1768 = vrsqrt.f32 %v498_v15  ;;  %517 = vperm.xlu1 %1720, %v503_v16   ;;  %v507_v19 = vmul.f32 %v503_v16, %v382_v23  ;;  %v62_v23 = vld [vmem:[%s2278_s5 + $0x10] sm:$0xff] }
 0x257   :  { %v1765_v20 = vpop.eup %1764 }
 0x258   :  { %v504_v21 = vmul.f32 %v1765_v20, %v54_v17  ;;  %v511_v22 = vsub.f32 %v60_v18, %v507_v19 }
 0x25a   :  { %522 = vperm.xlu0 %1721, %v504_v21   ;;  %545 = vperm.xlu1 %1720, %v511_v22   ;;  %v508_v26 = vmul.f32 %v504_v21, %v383_v33  ;;  %v63_v33 = vld [vmem:[%s2278_s5 + $0x18] sm:$0xff] }
 0x25b   :  { %v1767_v27 = vpop.eup %1766 }
 0x25c   :  { %v505_v28 = vmul.f32 %v1767_v27, %v55_v24  ;;  %v512_v29 = vsub.f32 %v61_v25, %v508_v26 }
 0x25e   :  { %527 = vperm.xlu0 %1721, %v505_v28   ;;  %550 = vperm.xlu1 %1720, %v512_v29   ;;  %v509_v30 = vmul.f32 %v505_v28, %v384_v45 }
 0x260   :  { %v1769_v32 = vpop.eup %1768  ;;  %v513_v34 = vsub.f32 %v62_v23, %v509_v30 }
 0x261   :  { %v506_v35 = vmul.f32 %v1769_v32, %v56_v31 }
 0x262   :  { %555 = vperm.xlu0 %1721, %v513_v34  }
 0x263   :  { %532 = vperm.xlu1 %1720, %v506_v35   ;;  %v510_v36 = vmul.f32 %v506_v35, %v385_v58 }
 0x265   :  { %v514_v37 = vsub.f32 %v63_v33, %v510_v36 }
 0x267   :  { %560 = vperm.xlu1 %1720, %v514_v37  }
 0x2d5   :  { %v518_v38 = vpop.permute.xlu1 %517 }
 0x2d6   :  { %v535_v41 = vmul.f32 %v518_v38, %v1998_v61  ;;  %v536_v42 = vmul.f32 %v518_v38, %v2000_v62 }
 0x2d9   :  { %v523_v39 = vpop.permute.xlu0 %522  ;;  %v546_v40 = vpop.permute.xlu1 %545 }
 0x2da   :  { %v537_v43 = vmul.f32 %v523_v39, %v2008_v1  ;;  %v538_v44 = vmul.f32 %v523_v39, %v2010_v2  ;;  %v563_v45 = vadd.f32 %v546_v40, %v535_v41  ;;  %v564_v46 = vadd.f32 %v546_v40, %v536_v42 }
 0x2dc   :  { %v571_v51 = vmax.f32 %v563_v45, 0.0  ;;  %v572_v54 = vmax.f32 %v564_v46, 0.0 }
 0x2dd   :  { %v528_v47 = vpop.permute.xlu0 %527  ;;  %v551_v48 = vpop.permute.xlu1 %550 }
 0x2de   :  { %v565_v49 = vadd.f32 %v551_v48, %v537_v43  ;;  %v566_v50 = vadd.f32 %v551_v48, %v538_v44  ;;  %v539_v62 = vmul.f32 %v528_v47, %v2020_v8  ;;  %v540_v1 = vmul.f32 %v528_v47, %v2022_v9 }
 0x2e0   :  { %v573_v52 = vmax.f32 %v565_v49, 0.0  ;;  %v574_v53 = vmax.f32 %v566_v50, 0.0 }
 0x2e1   :  { %v556_v56 = vpop.permute.xlu0 %555 }
 0x2e2   :  { %v2082_v55 = vpack.c.bf16 %v573_v52, %v571_v51  ;;  %v533_v61 = vpop.permute.xlu1 %532  ;;  %v1722_v57 = vpack.i.bf16 %v573_v52, %v571_v51  ;;  %v1727_v2 = vpack.i.bf16 %v574_v53, %v572_v54  ;;  %v1584_v58 = vpack.c.bf16 %v574_v53, %v572_v54 }
 0x2e3   :  { %v567_v59 = vadd.f32 %v556_v56, %v539_v62  ;;  %v568_v60 = vadd.f32 %v556_v56, %v540_v1  ;;  %v541_v63 = vmul.f32 %v533_v61, %v2032_v13  ;;  %v542_v0 = vmul.f32 %v533_v61, %v2034_v14 }
 0x2e4   :  { %1723 = vrot.lane.b32.xlu0 %v1722_v57, %s1802_s27  ;;  %1728 = vrot.lane.b32.xlu1 %v1727_v2, %s1802_s27 }
 0x2e5   :  { %v575_v12 = vmax.f32 %v567_v59, 0.0  ;;  %v576_v15 = vmax.f32 %v568_v60, 0.0 }
 0x2e6   :  { %v561_v5 = vpop.permute.xlu1 %560 }
 0x2e7   :  { %v569_v7 = vadd.f32 %v561_v5, %v541_v63  ;;  %v570_v11 = vadd.f32 %v561_v5, %v542_v0  ;;  %v667_v5 = vld [vmem:[%s2275_s2] sm:$0xff] }
 0x2e9   :  { %v577_v8 = vmax.f32 %v569_v7, 0.0  ;;  %v578_v16 = vmax.f32 %v570_v11, 0.0 }
 0x2eb   :  { %v2090_v9 = vpack.c.bf16 %v577_v8, %v575_v12  ;;  %v1737_v17 = vpack.i.bf16 %v578_v16, %v576_v15  ;;  %v1732_v18 = vpack.i.bf16 %v577_v8, %v575_v12  ;;  %v1588_v19 = vpack.c.bf16 %v578_v16, %v576_v15 }
 0x2ed   :  { %1738 = vrot.lane.b32.xlu1 %v1737_v17, %s1802_s27  ;;  %1733 = vrot.lane.b32.xlu0 %v1732_v18, %s1802_s27 }
 0x2f1   :  { %1748 = vrot.lane.b32.xlu1 %v1727_v2, %s1804_s29  ;;  %1743 = vrot.lane.b32.xlu0 %v1722_v57, %s1804_s29 }
 0x2f5   :  { %1758 = vrot.lane.b32.xlu1 %v1737_v17, %s1804_s29  ;;  %1753 = vrot.lane.b32.xlu0 %v1732_v18, %s1804_s29 }
 0x356   :  { %v1724_v13 = vpop.permute.xlu0 %1723  ;;  %v1729_v21 = vpop.permute.xlu1 %1728 }
 0x357   :  { %v1726_v14 = vunpack.i.h.bf16 %v1724_v13  ;;  %v1725_v20 = vunpack.i.l.bf16 %v1724_v13  ;;  %v1731_v22 = vunpack.i.h.bf16 %v1729_v21  ;;  %v1730_v24 = vunpack.i.l.bf16 %v1729_v21 }
 0x359   :  { %v596_v25 = vsel %vm110_vm1, %v1726_v14, %v1731_v22  ;;  %v600_v26 = vsel %vm110_vm1, %v1731_v22, %v1726_v14  ;;  %v595_v27 = vsel %vm110_vm1, %v1725_v20, %v1730_v24  ;;  %v599_v28 = vsel %vm110_vm1, %v1730_v24, %v1725_v20 }
 0x35a   :  { %v1572_v30 = vpack.c.bf16 %v596_v25, %v595_v27  ;;  %v1575_v31 = vpack.c.bf16 %v600_v26, %v599_v28 }
 0x35c   :  { %1574 = vmatprep.subr.msk.bf16.mxu1 %vm2109_vm15, %v1572_v30 }
 0x35d   :  { %1577 = vmatpush1.bf16.msk.msra.mxu1 %vm2116_vm4, %v1575_v31 }
 0x35f   :  { %v1734_v32 = vpop.permute.xlu0 %1733  ;;  %v1739_v34 = vpop.permute.xlu1 %1738 }
 0x360   :  { %v1736_v35 = vunpack.i.h.bf16 %v1734_v32  ;;  %v1735_v33 = vunpack.i.l.bf16 %v1734_v32  ;;  %v1741_v36 = vunpack.i.h.bf16 %v1739_v34  ;;  %v1740_v37 = vunpack.i.l.bf16 %v1739_v34 }
 0x362   :  { %v598_v38 = vsel %vm110_vm1, %v1736_v35, %v1741_v36  ;;  %v602_v39 = vsel %vm110_vm1, %v1741_v36, %v1736_v35  ;;  %v597_v40 = vsel %vm110_vm1, %v1735_v33, %v1740_v37  ;;  %v601_v41 = vsel %vm110_vm1, %v1740_v37, %v1735_v33  ;;  %vm1593_vm1 = vmpackc.low %vm129_vm3, %vm129_vm3 }
 0x363   :  { %v1578_v42 = vpack.c.bf16 %v598_v38, %v597_v40  ;;  %v1581_v43 = vpack.c.bf16 %v602_v39, %v601_v41  ;;  %v1744_v44 = vpop.permute.xlu0 %1743  ;;  %v1749_v45 = vpop.permute.xlu1 %1748  ;;  %v57_v39 = vld [vmem:[%s2277_s4 + $0x20] sm:$0xff] }
 0x364   :  { %v1746_v46 = vunpack.i.h.bf16 %v1744_v44  ;;  %v1745_v47 = vunpack.i.l.bf16 %v1744_v44  ;;  %v1751_v48 = vunpack.i.h.bf16 %v1749_v45  ;;  %v1750_v49 = vunpack.i.l.bf16 %v1749_v45 }
 0x365   :  { %1580 = vmatprep.subr.msk.bf16.mxu1 %vm2109_vm15, %v1578_v42  ;;  %v64_v42 = vld [vmem:[%s2278_s5 + $0x20] sm:$0xff] }
 0x366   :  { %1583 = vmatpush1.bf16.msk.msra.mxu1 %vm2116_vm4, %v1581_v43  ;;  %v648_v52 = vsel %vm125_vm6, %v1751_v48, %v1746_v46  ;;  %v647_v53 = vsel %vm125_vm6, %v1750_v49, %v1745_v47  ;;  %v644_v62 = vsel %vm125_vm6, %v1746_v46, %v1751_v48  ;;  %v643_v1 = vsel %vm125_vm6, %v1745_v47, %v1750_v49  ;;  %v58_v43 = vld [vmem:[%s2277_s4 + $0x28] sm:$0xff] }
 0x367   :  { %v1754_v50 = vpop.permute.xlu0 %1753  ;;  %v1759_v51 = vpop.permute.xlu1 %1758  ;;  %1585 = vmatprep.subr.bf16.mxu1 %v1584_v58  ;;  %v1592_v2 = vpack.c.bf16 %v648_v52, %v647_v53  ;;  %v1595_v10 = vpack.c.bf16 %v644_v62, %v643_v1  ;;  %v65_v48 = vld [vmem:[%s2278_s5 + $0x28] sm:$0xff] }
 0x368   :  { %v1756_v54 = vunpack.i.h.bf16 %v1754_v50  ;;  %v1755_v56 = vunpack.i.l.bf16 %v1754_v50  ;;  %v1761_v61 = vunpack.i.h.bf16 %v1759_v51  ;;  %v1760_v57 = vunpack.i.l.bf16 %v1759_v51 }
 0x36a   :  { %1587 = vmatpush1.bf16.msra.mxu1 %v2082_v55  ;;  %v650_v58 = vsel %vm125_vm6, %v1761_v61, %v1756_v54  ;;  %v649_v59 = vsel %vm125_vm6, %v1760_v57, %v1755_v56  ;;  %v646_v55 = vsel %vm125_vm6, %v1756_v54, %v1761_v61  ;;  %v645_v60 = vsel %vm125_vm6, %v1755_v56, %v1760_v57 }
 0x36b   :  { %1589 = vmatprep.subr.bf16.mxu1 %v1588_v19  ;;  %v1598_v63 = vpack.c.bf16 %v650_v58, %v649_v59  ;;  %v1601_v0 = vpack.c.bf16 %v646_v55, %v645_v60  ;;  %vm984_vm6 = vcmask 130048  }
 0x36e   :  { %1591 = vmatpush1.bf16.msra.mxu1 %v2090_v9 }
 0x36f   :  { %1594 = vmatprep.subr.msk.bf16.mxu1 %vm1593_vm1, %v1592_v2 }
 0x372   :  { %1597 = vmatpush1.bf16.msk.msra.mxu1 %vm1596_vm10, %v1595_v10 }
 0x373   :  { %1600 = vmatprep.subr.msk.bf16.mxu1 %vm1593_vm1, %v1598_v63 }
 0x376   :  { %1603 = vmatpush1.bf16.msk.msra.mxu1 %vm1596_vm10, %v1601_v0 }
 0x377   :  { %1620 = vmatprep.subr.bf16.mxu1 %v1809_v4 }
 0x379   :  { %1247 = vmatmul.mubr.msk.f32.vlgmr.msra.gmra.mrb[8].mxu1 %vm693_vm12, %v667_v5 }
 0x37a   :  { %770 = vmatprep.mubr.f32.mxu1 %v1808_v3  ;;  %1621 = vmatpush3.bf16.msra.mxu1 %v1809_v4 }
 0x37b   :  { %1622 = vmatprep.subr.bf16.mxu1 %v1809_v4 }
 0x37d   :  { %1248 = vmatmul.mubr.msk.f32.gmra.mrb[10].mxu1 %vm693_vm12, %v668_v6  ;;  %v983_v6 = vld [vmem:[%s2276_s3] sm:$0xff] }
 0x37e   :  { %1623 = vmatpush3.bf16.msra.mxu1 %v1809_v4 }
 0x37f   :  { %1624 = vmatprep.subr.bf16.mxu1 %v1809_v4 }
 0x382   :  { %1625 = vmatpush3.bf16.msra.mxu1 %v1809_v4 }
 0x383   :  { %1626 = vmatprep.subr.bf16.mxu1 %v1809_v4 }
 0x386   :  { %1627 = vmatpush3.bf16.msra.mxu1 %v1809_v4 }
 0x387   :  { %1628 = vmatprep.subr.bf16.mxu1 %v1809_v4 }
 0x38a   :  { %1629 = vmatpush3.bf16.msra.mxu1 %v1809_v4 }
 0x38b   :  { %1630 = vmatprep.subr.bf16.mxu1 %v1809_v4 }
 0x38e   :  { %1631 = vmatpush3.bf16.msra.mxu1 %v1809_v4 }
 0x38f   :  { %1632 = vmatprep.subr.bf16.mxu1 %v1809_v4 }
 0x392   :  { %1633 = vmatpush3.bf16.msra.mxu1 %v1809_v4 }
 0x393   :  { %1634 = vmatprep.subr.bf16.mxu1 %v1809_v4 }
 0x396   :  { %1635 = vmatpush3.bf16.msra.mxu1 %v1809_v4 }
 0x397   :  { %1640 = vmatprep.subr.bf16.mxu1 %v1809_v4 }
 0x44c   :  { %v2184_v7 = vpop.f32.mrb[8].mxu1 }
 0x44d   :  { %v2186_v11 = vpop.f32.mrb[9].mxu1  ;;  %v854_v15 = vmul.f32 %v2184_v7, %v2184_v7 }
 0x44e   :  { %v855_v12 = vmul.f32 %v2186_v11, %v2186_v11  ;;  %841 = vmatprep.mubr.f32.mxu0 %v2186_v11 }
 0x44f   :  { %842 = vmatmul.mubr.f32.vlgmr.msra.gmra.mrb[16].mxu0 %v2184_v7 }
 0x450   :  { %v2194_v8 = vpop.f32.mrb[10].mxu1  ;;  %922 = vmatprep.mubr.f32.mxu1 %v855_v12 }
 0x451   :  { %v2196_v16 = vpop.f32.mrb[11].mxu1  ;;  %923 = vmatmul.mubr.f32.vlgmr.msra.gmra.mrb[12].mxu1 %v854_v15  ;;  %v856_v17 = vmul.f32 %v2194_v8, %v2194_v8 }
 0x452   :  { %v857_v9 = vmul.f32 %v2196_v16, %v2196_v16  ;;  %846 = vmatprep.mubr.f32.mxu0 %v2196_v16  ;;  %1641 = vmatpush3.bf16.msra.mxu1 %v1809_v4 }
 0x453   :  { %847 = vmatmul.mubr.f32.gmra.mrb[18].mxu0 %v2194_v8  ;;  %1642 = vmatprep.subr.bf16.mxu1 %v1809_v4 }
 0x454   :  { %927 = vmatprep.mubr.f32.mxu1 %v857_v9  ;;  %1052 = vmatprep.mubr.f32.mxu0 %v1808_v3 }
 0x455   :  { %928 = vmatmul.mubr.f32.gmra.mrb[14].mxu1 %v856_v17 }
 0x456   :  { %1643 = vmatpush3.bf16.msra.mxu1 %v1809_v4 }
 0x457   :  { %1644 = vmatprep.subr.bf16.mxu1 %v1809_v4 }
 0x45a   :  { %1645 = vmatpush3.bf16.msra.mxu1 %v1809_v4 }
 0x45b   :  { %1646 = vmatprep.subr.bf16.mxu1 %v1809_v4 }
 0x45e   :  { %1647 = vmatpush3.bf16.msra.mxu1 %v1809_v4 }
 0x45f   :  { %1648 = vmatprep.subr.bf16.mxu1 %v1809_v4 }
 0x462   :  { %1649 = vmatpush3.bf16.msra.mxu1 %v1809_v4 }
 0x463   :  { %1650 = vmatprep.subr.bf16.mxu1 %v1809_v4 }
 0x466   :  { %1651 = vmatpush3.bf16.msra.mxu1 %v1809_v4 }
 0x467   :  { %1652 = vmatprep.subr.bf16.mxu1 %v1809_v4 }
 0x46a   :  { %1653 = vmatpush3.bf16.msra.mxu1 %v1809_v4 }
 0x46b   :  { %1654 = vmatprep.subr.bf16.mxu1 %v1809_v4 }
 0x46e   :  { %1655 = vmatpush3.bf16.msra.mxu1 %v1809_v4 }
 0x522   :  { %v1402_v3 = vpop.f32.mrb[16].mxu0 }
 0x523   :  { %v1403_v18 = vpop.f32.mrb[17].mxu0 }
 0x524   :  { %v1404_v19 = vadd.f32 %v1403_v18, %v1402_v3  ;;  %v1440_v13 = vpop.f32.mrb[12].mxu1 }
 0x525   :  { %v1441_v14 = vpop.f32.mrb[13].mxu1 }
 0x526   :  { %v852_v20 = vmul.f32 0.00390625, %v1404_v19  ;;  %v1442_v21 = vadd.f32 %v1441_v14, %v1440_v13  ;;  %v1405_v22 = vpop.f32.mrb[18].mxu0 }
 0x527   :  { %v1406_v24 = vpop.f32.mrb[19].mxu0 }
 0x528   :  { %v935_v25 = vmul.f32 %v852_v20, %v852_v20  ;;  %v933_v26 = vmul.f32 0.00390625, %v1442_v21  ;;  %v1407_v27 = vadd.f32 %v1406_v24, %v1405_v22  ;;  %v1443_v28 = vpop.f32.mrb[14].mxu1  ;;  %v59_v22 = vld [vmem:[%s2277_s4 + $0x30] sm:$0xff]  ;;  %s1776_s4 = scalar_lea.vmem %s1236_s22, 256 }
 0x529   :  { %v1444_v29 = vpop.f32.mrb[15].mxu1  ;;  %p1777_p0 = scmp.ne.s32.totalorder %s1236_s22, %s1776_s4  ;;  %p1782_p2 = scmp.lt.s32.totalorder %s1776_s4, %s1776_s4 }
 0x52a   :  { %v937_v23 = vsub.f32 %v933_v26, %v935_v25  ;;  %v853_v30 = vmul.f32 0.00390625, %v1407_v27  ;;  %v1445_v31 = vadd.f32 %v1444_v29, %v1443_v28  ;;  %v66_v26 = vld [vmem:[%s2278_s5 + $0x30] sm:$0xff] }
 0x52b   :  { %p1783_p3 = por %p1782_p2, %p1781_p1 }
 0x52c   :  { %v939_v32 = vmax.f32 %v937_v23, 0.0  ;;  %v936_v34 = vmul.f32 %v853_v30, %v853_v30  ;;  %v934_v35 = vmul.f32 0.00390625, %v1445_v31 }
 0x52d   :  { %p1784_p4 = pnand %p1783_p3, %p1777_p0 }
 0x52e   :  { %v941_v33 = vadd.f32 1e-05, %v939_v32  ;;  %v938_v36 = vsub.f32 %v934_v35, %v936_v34 }
 0x530   :  { %1770 = vrsqrt.f32 %v941_v33  ;;  %v940_v37 = vmax.f32 %v938_v36, 0.0 }
 0x532   :  { %v942_v38 = vadd.f32 1e-05, %v940_v37 }
 0x534   :  { %1772 = vrsqrt.f32 %v942_v38 }
 0x53a   :  { %v1771_v40 = vpop.eup %1770 }
 0x53b   :  { %v945_v41 = vmul.f32 %v1771_v40, %v57_v39 }
 0x53d   :  { %953 = vperm.xlu0 %1721, %v945_v41   ;;  %v947_v44 = vmul.f32 %v945_v41, %v852_v20 }
 0x53e   :  { %v1773_v45 = vpop.eup %1772 }
 0x53f   :  { %v949_v46 = vsub.f32 %v64_v42, %v947_v44  ;;  %v946_v47 = vmul.f32 %v1773_v45, %v58_v43 }
 0x541   :  { %967 = vperm.xlu0 %1721, %v949_v46   ;;  %958 = vperm.xlu1 %1720, %v946_v47   ;;  %v948_v49 = vmul.f32 %v946_v47, %v853_v30 }
 0x543   :  { %v950_v50 = vsub.f32 %v65_v48, %v948_v49 }
 0x545   :  { %972 = vperm.xlu1 %1720, %v950_v50  }
 0x5bc   :  { %v954_v51 = vpop.permute.xlu0 %953 }
 0x5bd   :  { %v961_v54 = vmul.f32 %v954_v51, %v2184_v7  ;;  %v962_v56 = vmul.f32 %v954_v51, %v2186_v11 }
 0x5c0   :  { %v968_v52 = vpop.permute.xlu0 %967  ;;  %v959_v53 = vpop.permute.xlu1 %958 }
 0x5c1   :  { %v975_v61 = vadd.f32 %v968_v52, %v961_v54  ;;  %v976_v57 = vadd.f32 %v968_v52, %v962_v56  ;;  %v963_v62 = vmul.f32 %v959_v53, %v2194_v8  ;;  %v964_v1 = vmul.f32 %v959_v53, %v2196_v16 }
 0x5c3   :  { %v979_v10 = vmax.f32 %v975_v61, 0.0  ;;  %v980_v55 = vmax.f32 %v976_v57, 0.0 }
 0x5c4   :  { %v973_v2 = vpop.permute.xlu1 %972 }
 0x5c5   :  { %v977_v58 = vadd.f32 %v973_v2, %v963_v62  ;;  %v978_v59 = vadd.f32 %v973_v2, %v964_v1 }
 0x5c7   :  { %v981_v60 = vmax.f32 %v977_v58, 0.0  ;;  %v982_v63 = vmax.f32 %v978_v59, 0.0 }
 0x5c9   :  { %v1638_v0 = vpack.c.bf16 %v981_v60, %v979_v10  ;;  %v1636_v5 = vpack.c.bf16 %v982_v63, %v980_v55 }
 0x5cb   :  { %1637 = vmatprep.subr.bf16.mxu0 %v1636_v5 }
 0x5cc   :  { %1639 = vmatpush1.bf16.msra.mxu0 %v1638_v0 }
 0x5cd   :  { %1656 = vmatprep.subr.bf16.mxu0 %v1809_v4 }
 0x5cf   :  { %1249 = vmatmul.mubr.msk.f32.vlgmr.msra.gmra.mrb[20].mxu0 %vm984_vm6, %v983_v6 }
 0x5d0   :  { %1657 = vmatpush3.bf16.msra.mxu0 %v1809_v4 }
 0x5d1   :  { %1658 = vmatprep.subr.bf16.mxu0 %v1809_v4 }
 0x5d4   :  { %1659 = vmatpush3.bf16.msra.mxu0 %v1809_v4 }
 0x5d5   :  { %1660 = vmatprep.subr.bf16.mxu0 %v1809_v4 }
 0x5d8   :  { %1661 = vmatpush3.bf16.msra.mxu0 %v1809_v4 }
 0x5d9   :  { %1662 = vmatprep.subr.bf16.mxu0 %v1809_v4 }
 0x5dc   :  { %1663 = vmatpush3.bf16.msra.mxu0 %v1809_v4 }
 0x5dd   :  { %1664 = vmatprep.subr.bf16.mxu0 %v1809_v4 }
 0x5e0   :  { %1665 = vmatpush3.bf16.msra.mxu0 %v1809_v4 }
 0x5e1   :  { %1666 = vmatprep.subr.bf16.mxu0 %v1809_v4 }
 0x5e4   :  { %1667 = vmatpush3.bf16.msra.mxu0 %v1809_v4 }
 0x5e5   :  { %1668 = vmatprep.subr.bf16.mxu0 %v1809_v4 }
 0x5e8   :  { %1669 = vmatpush3.bf16.msra.mxu0 %v1809_v4 }
 0x5e9   :  { %1670 = vmatprep.subr.bf16.mxu0 %v1809_v4 }
 0x5ec   :  { %1671 = vmatpush3.bf16.msra.mxu0 %v1809_v4 }
 0x6a2   :  { %v1054_v7 = vpop.f32.mrb[20].mxu0 }
 0x6a3   :  { %v1056_v11 = vpop.f32.mrb[21].mxu0  ;;  %v1130_v15 = vmul.f32 %v1054_v7, %v1054_v7 }
 0x6a4   :  { %v1131_v12 = vmul.f32 %v1056_v11, %v1056_v11  ;;  %1123 = vmatprep.mubr.f32.mxu1 %v1056_v11 }
 0x6a5   :  { %1124 = vmatmul.mubr.f32.vlgmr.msra.gmra.mrb[16].mxu1 %v1054_v7 }
 0x6a6   :  { %1196 = vmatprep.mubr.f32.mxu0 %v1131_v12 }
 0x6a7   :  { %1197 = vmatmul.mubr.f32.vlgmr.msra.gmra.mrb[22].mxu0 %v1130_v15 }
 0x778   :  { %v1478_v8 = vpop.f32.mrb[16].mxu1 }
 0x779   :  { %v1479_v16 = vpop.f32.mrb[17].mxu1 }
 0x77a   :  { %v1480_v9 = vadd.f32 %v1479_v16, %v1478_v8  ;;  %v1513_v17 = vpop.f32.mrb[22].mxu0 }
 0x77b   :  { %v1514_v3 = vpop.f32.mrb[23].mxu0 }
 0x77c   :  { %v1129_v18 = vmul.f32 0.00390625, %v1480_v9  ;;  %v1515_v19 = vadd.f32 %v1514_v3, %v1513_v17 }
 0x77e   :  { %v1203_v13 = vmul.f32 %v1129_v18, %v1129_v18  ;;  %v1202_v14 = vmul.f32 0.00390625, %v1515_v19 }
 0x780   :  { %v1204_v20 = vsub.f32 %v1202_v14, %v1203_v13 }
 0x782   :  { %v1205_v21 = vmax.f32 %v1204_v20, 0.0 }
 0x784   :  { %v1206_v4 = vadd.f32 1e-05, %v1205_v21 }
 0x786   :  { %1774 = vrsqrt.f32 %v1206_v4 }
 0x790   :  { %v1775_v24 = vpop.eup %1774 }
 0x791   :  { %v1208_v25 = vmul.f32 %v1775_v24, %v59_v22 }
 0x793   :  { %1213 = vperm.xlu0 %1721, %v1208_v25   ;;  %v1209_v27 = vmul.f32 %v1208_v25, %v1129_v18 }
 0x795   :  { %v1210_v28 = vsub.f32 %v66_v26, %v1209_v27 }
 0x797   :  { %1220 = vperm.xlu1 %1720, %v1210_v28  }
 0x812   :  { %v1214_v29 = vpop.permute.xlu0 %1213 }
 0x813   :  { %v1216_v23 = vmul.f32 %v1214_v29, %v1054_v7  ;;  %v1217_v30 = vmul.f32 %v1214_v29, %v1056_v11 }
 0x816   :  { %v1221_v31 = vpop.permute.xlu1 %1220 }
 0x817   :  { %v1223_v32 = vadd.f32 %v1221_v31, %v1216_v23  ;;  %v1224_v34 = vadd.f32 %v1221_v31, %v1217_v30 }
 0x819   :  { %v1225_v35 = vmax.f32 %v1223_v32, 0.0  ;;  %v1226_v33 = vmax.f32 %v1224_v34, 0.0 }
 0x81b   :  { %1227 = vst [vmem:[#allocation4] sm:$0xff] %v1225_v35  ;;  %1228 = vst [vmem:[#allocation4 + $0x8] sm:$0xff] %v1226_v33 }
 0x81c   :  { %1787 = shalt.err (!%p1784_p4)
}
 0x81d   :  { %s1788_s24 = scalar_lea.hbm %s2279_s6, 256 }
 0x81e   :  { %p1789_p5 = scmp.ne.s32.totalorder %s2279_s6, %s1788_s24  ;;  %p1792_p6 = scmp.lt.u32.totalorder %s1788_s24, %s2279_s6 }
 0x820   :  { %p1794_p7 = pnand %p1792_p6, %p1789_p5 }
 0x822   :  { %1797 = shalt.err (!%p1794_p7)
}
 0x823   :  { %1238 = dma.vmem_to_hbm [thread:$0]  %s1236_s22, 256, %s2279_s6, [#allocation5]  }
 0x824   :  { %1798 = dma.done.wait [#allocation5], 256  }
 0x825   :  { %1799 = vsyncadd [#allocation5], 4294967040 }
 0x826   :  { %1242 = vsyncpa [#allocation5], 1 }

</bundles_post_ra>
